<compile_context>
chip_gen: v7x
topology: tpu7x:2x2x1
jax: 0.10.0
libtpu: 0.0.40
codegen_flags: <defaults>
</compile_context>

<pallas_src>
import functools

import jax
import jax.numpy as jnp
from jax import lax
from jax.experimental import pallas as pl
from jax.experimental.pallas import tpu as pltpu


def _ce2d_kernel(x_ref, t_ref, w_ref, out_ref, *, hw, tile, masked_tail):
    """One grid step: accumulate per-lane weighted NLL sums and valid counts.

    x_ref:   (C, T)  logits tile (channels on sublanes, pixels on lanes)
    t_ref:   (1, T)  int32 targets (< 0 == ignore)
    w_ref:   (C, 1)  per-class weights
    out_ref: (2, T)  f32 per-batch partials; row 0 = weighted NLL sum,
                     row 1 = valid-pixel count.  Resident across the spatial
                     (reduction) grid axis; distinct block per batch index.
    """
    j = pl.program_id(1)

    @pl.when(j == 0)
    def _init():
        out_ref[...] = jnp.zeros_like(out_ref)

    x = x_ref[...].astype(jnp.float32)       # (C, T)
    t = t_ref[...]                           # (1, T) int32
    w = w_ref[...].astype(jnp.float32)       # (C, 1)

    # Numerically stable log-softmax pieces over the channel (sublane) axis.
    m = jnp.max(x, axis=0, keepdims=True)                                # (1, T)
    xm = x - m                                                           # (C, T)
    logsum = jnp.log(jnp.sum(jnp.exp(xm), axis=0, keepdims=True))        # (1, T)

    # Fused one-hot gather of xm[t] and w[t]:
    #   -w[t] * log_softmax(x)[t] == w[t] * (logsum - xm[t])
    # Channel index stays (C, 1); the == broadcasts against the (1, T) targets.
    ch = lax.broadcasted_iota(jnp.int32, (x.shape[0], 1), 0)             # (C, 1)
    onehot = ch == t                                                     # (C, T)
    x_t = jnp.sum(jnp.where(onehot, xm, 0.0), axis=0, keepdims=True)     # (1, T)
    w_t = jnp.sum(jnp.where(onehot, w, 0.0), axis=0, keepdims=True)      # (1, T)
    per_pixel = w_t * (logsum - x_t)                                     # (1, T)

    # Valid mask: target >= 0; ragged spatial tail masked only when needed.
    # Note: targets >= C silently contribute 0 but are counted (as before).
    if masked_tail:
        lane = lax.broadcasted_iota(jnp.int32, t.shape, 1)               # (1, T)
        valid = (t >= 0) & ((j * tile + lane) < hw)
    else:
        valid = t >= 0

    # True selects keep NaN/garbage from masked tail lanes out of the sums.
    contrib = jnp.where(valid, per_pixel, 0.0)                           # (1, T)
    cnt = valid.astype(jnp.float32)                                      # (1, T)

    # Single merged += per step: row 0 <- contrib, row 1 <- cnt.
    row = lax.broadcasted_iota(jnp.int32, (2, tile), 0)                  # (2, T)
    out_ref[...] += jnp.where(row == 0, contrib, cnt)                    # (2, T)


def cross_entropy_loss_2d(inputs, target, weight=None, *,
                          tile_lanes=None, max_tile=8192):
    """inputs: (N, C, H, W) float; target: (N, H, W) int (< 0 == ignore)."""
    n, c, h, w = inputs.shape
    hw = h * w
    dtype_bytes = jnp.dtype(inputs.dtype).itemsize

    if weight is None:
        weight = jnp.ones((c,), jnp.float32)
    wv = jnp.asarray(weight, jnp.float32).reshape(c, 1)

    # Lane-dense layout straight from NCHW: pure metadata reshapes, no
    # transpose / cast / pad HBM passes (f32 upcast happens inside the kernel).
    x = inputs.reshape(n, c, hw)
    t = target.reshape(n, 1, hw).astype(jnp.int32)

    if tile_lanes is None:
        # Bytes per lane: 2x double-buffered logits + targets blocks,
        # double-buffered (2, T) f32 output block, ~4 live f32 (C, T)
        # intermediates.  Budget ~8 MiB -> fits v5e's 16 MiB default scoped
        # VMEM and leaves ample headroom on v7x (64 MiB physical).
        per_lane = 2 * (c * dtype_bytes + 4) + 2 * 2 * 4 + 4 * c * 4
        budget = 8 * 1024 * 1024
        tile_lanes = max(512, min(max_tile, (budget // per_lane) // 128 * 128))
    assert tile_lanes % 128 == 0, "tile_lanes must be a multiple of 128"

    tile = hw if hw <= tile_lanes else tile_lanes
    num_tiles = pl.cdiv(hw, tile)
    masked_tail = (hw % tile) != 0

    kernel = functools.partial(_ce2d_kernel, hw=hw, tile=tile,
                               masked_tail=masked_tail)

    partials = pl.pallas_call(
        kernel,
        out_shape=jax.ShapeDtypeStruct((n, 2, tile), jnp.float32),
        grid_spec=pltpu.PrefetchScalarGridSpec(
            num_scalar_prefetch=0,
            grid=(n, num_tiles),
            in_specs=[
                pl.BlockSpec((pl.Squeezed(), c, tile), lambda b, j: (b, 0, j)),
                pl.BlockSpec((pl.Squeezed(), 1, tile), lambda b, j: (b, 0, j)),
                pl.BlockSpec((c, 1), lambda b, j: (0, 0)),
            ],
            out_specs=pl.BlockSpec((pl.Squeezed(), 2, tile),
                                   lambda b, j: (b, 0, 0)),
        ),
        compiler_params=pltpu.CompilerParams(
            # batch axis parallel (2-TC sharding on v7x), spatial-tile axis is
            # the accumulation axis.
            dimension_semantics=("parallel", "arbitrary"),
            vmem_limit_bytes=32 * 1024 * 1024,
        ),
    )(x, t, wv)

    # Tiny final reduce + divide in plain JAX (O(n * tile) scalars).
    total = jnp.sum(partials[:, 0, :])
    count = jnp.sum(partials[:, 1, :])
    # count == 0 -> 0/0 = NaN, matching the PyTorch module's behaviour.
    return total / count


def _reference_loss(inputs, target, weight=None):
    """Pure-JAX reference matching the PyTorch module."""
    c = inputs.shape[1]
    wv = (jnp.ones((c,), jnp.float32) if weight is None
          else jnp.asarray(weight, jnp.float32))
    log_p = jax.nn.log_softmax(inputs.astype(jnp.float32), axis=1)   # (N,C,H,W)
    log_p = jnp.transpose(log_p, (0, 2, 3, 1))                       # (N,H,W,C)
    valid = target >= 0
    t_safe = jnp.where(valid, target, 0)
    gathered = jnp.take_along_axis(log_p, t_safe[..., None], axis=-1)[..., 0]
    w_t = wv[t_safe]
    total = jnp.sum(jnp.where(valid, -w_t * gathered, 0.0))
    return total / jnp.sum(valid)


if __name__ == "__main__":
    key = jax.random.PRNGKey(0)
    k1, k2, k3, k4 = jax.random.split(key, 4)

    # Case 1: small NCHW, per-class weights, single spatial tile, ignore labels.
    n, c, h, w = 2, 4, 16, 16
    x1 = jax.random.normal(k1, (n, c, h, w), dtype=jnp.float32)
    t1 = jax.random.randint(k2, (n, h, w), -1, c, dtype=jnp.int32)  # -1 == ignore
    w1 = 1.0 + 0.1 * jnp.arange(c, dtype=jnp.float32)
    loss1 = jax.block_until_ready(cross_entropy_loss_2d(x1, t1, w1))
    ref1 = _reference_loss(x1, t1, w1)
    assert jnp.allclose(loss1, ref1, rtol=1e-5, atol=1e-5), (loss1, ref1)

    # Case 2: ragged spatial extent, multi-tile reduction grid, default weights.
    n, c, h, w = 1, 5, 18, 18
    x2 = jax.random.normal(k3, (n, c, h, w), dtype=jnp.float32)
    t2 = jax.random.randint(k4, (n, h, w), -1, c, dtype=jnp.int32)
    loss2 = jax.block_until_ready(
        cross_entropy_loss_2d(x2, t2, None, tile_lanes=128))
    ref2 = _reference_loss(x2, t2, None)
    assert jnp.allclose(loss2, ref2, rtol=1e-5, atol=1e-5), (loss2, ref2)

    print("KERNEL_OK")
</pallas_src>

<mosaic_0001>
module attributes {stable_mosaic.version = 11 : i64} {
  func.func @_ce2d_kernel(%arg0: i32, %arg1: i32, %arg2: memref<1x4x256xf32, #tpu.memory_space<vmem>>, %arg3: memref<1x1x256xi32, #tpu.memory_space<vmem>>, %arg4: memref<4x1xf32, #tpu.memory_space<vmem>>, %arg5: memref<1x2x256xf32, #tpu.memory_space<vmem>>) attributes {dimension_semantics = [#tpu.dimension_semantics<parallel>, #tpu.dimension_semantics<arbitrary>], iteration_bounds = array<i64: 2, 1>, scalar_prefetch = 0 : i64, scratch_operands = 0 : i64, tpu.core_type = #tpu.core_type<tc>, window_params = [{transform_indices = @transform_0, window_bounds = array<i64: 1, 4, 256>}, {transform_indices = @transform_1, window_bounds = array<i64: 1, 1, 256>}, {pipeline_mode = #tpu.pipeline_mode<synchronous>, transform_indices = @transform_2, window_bounds = array<i64: 4, 1>}, {transform_indices = @transform_3, window_bounds = array<i64: 1, 2, 256>}]} {
    %c0_i32 = arith.constant 0 : i32
    %0 = arith.cmpi eq, %arg1, %c0_i32 : i32
    %1 = arith.extui %0 : i1 to i32
    %c0_i32_0 = arith.constant 0 : i32
    %2 = arith.cmpi ne, %1, %c0_i32_0 : i32
    scf.if %2 {
      %cst_22 = arith.constant 0.000000e+00 : f32
      %52 = vector.broadcast %cst_22 : f32 to vector<2x256xf32>
      %c0_23 = arith.constant 0 : index
      %c0_24 = arith.constant 0 : index
      %c0_25 = arith.constant 0 : index
      %53 = vector.load %arg5[%c0_23, %c0_24, %c0_25] : memref<1x2x256xf32, #tpu.memory_space<vmem>>, vector<1x2x256xf32>
      %54 = vector.shape_cast %53 : vector<1x2x256xf32> to vector<2x256xf32>
      %55 = vector.shape_cast %52 : vector<2x256xf32> to vector<1x2x256xf32>
      tpu.vector_store %arg5[%c0_23, %c0_24, %c0_25], %55 {strides = array<i32>} : memref<1x2x256xf32, #tpu.memory_space<vmem>>, vector<1x2x256xf32>,
    } else {
    }
    %c0 = arith.constant 0 : index
    %c0_1 = arith.constant 0 : index
    %c0_2 = arith.constant 0 : index
    %3 = vector.load %arg2[%c0, %c0_1, %c0_2] : memref<1x4x256xf32, #tpu.memory_space<vmem>>, vector<1x4x256xf32>
    %4 = vector.shape_cast %3 : vector<1x4x256xf32> to vector<4x256xf32>
    %c0_3 = arith.constant 0 : index
    %c0_4 = arith.constant 0 : index
    %c0_5 = arith.constant 0 : index
    %5 = vector.load %arg3[%c0_3, %c0_4, %c0_5] : memref<1x1x256xi32, #tpu.memory_space<vmem>>, vector<1x1x256xi32>
    %6 = vector.shape_cast %5 : vector<1x1x256xi32> to vector<1x256xi32>
    %c0_6 = arith.constant 0 : index
    %c0_7 = arith.constant 0 : index
    %7 = vector.load %arg4[%c0_6, %c0_7] : memref<4x1xf32, #tpu.memory_space<vmem>>, vector<4x1xf32>
    %cst = arith.constant dense<0xFF800000> : vector<256xf32>
    %8 = vector.multi_reduction <maximumf>, %4, %cst [0] : vector<4x256xf32> to vector<256xf32>
    %9 = vector.shape_cast %8 : vector<256xf32> to vector<1x256xf32>
    %10 = vector.broadcast %9 : vector<1x256xf32> to vector<4x256xf32>
    %11 = arith.subf %4, %10 : vector<4x256xf32>
    %12 = math.exp %11 : vector<4x256xf32>
    %cst_8 = arith.constant dense<0.000000e+00> : vector<256xf32>
    %13 = vector.multi_reduction <add>, %12, %cst_8 [0] : vector<4x256xf32> to vector<256xf32>
    %14 = vector.shape_cast %13 : vector<256xf32> to vector<1x256xf32>
    %15 = math.log %14 : vector<1x256xf32>
    %16 = tpu.iota {dimensions = array<i32: 0>} : vector<4x1xi32>
    %17 = vector.broadcast %16 : vector<4x1xi32> to vector<4x256xi32>
    %18 = vector.broadcast %6 : vector<1x256xi32> to vector<4x256xi32>
    %19 = arith.cmpi eq, %17, %18 : vector<4x256xi32>
    %cst_9 = arith.constant 0.000000e+00 : f32
    %20 = vector.broadcast %cst_9 : f32 to vector<4x256xf32>
    %21 = arith.select %19, %11, %20 : vector<4x256xi1>, vector<4x256xf32>
    %cst_10 = arith.constant dense<0.000000e+00> : vector<256xf32>
    %22 = vector.multi_reduction <add>, %21, %cst_10 [0] : vector<4x256xf32> to vector<256xf32>
    %23 = vector.shape_cast %22 : vector<256xf32> to vector<1x256xf32>
    %cst_11 = arith.constant 0.000000e+00 : f32
    %24 = vector.shape_cast %7 : vector<4x1xf32> to vector<4x1xf32>
    %25 = vector.broadcast %24 : vector<4x1xf32> to vector<4x256xf32>
    %26 = vector.broadcast %cst_11 : f32 to vector<4x256xf32>
    %27 = arith.select %19, %25, %26 : vector<4x256xi1>, vector<4x256xf32>
    %cst_12 = arith.constant dense<0.000000e+00> : vector<256xf32>
    %28 = vector.multi_reduction <add>, %27, %cst_12 [0] : vector<4x256xf32> to vector<256xf32>
    %29 = vector.shape_cast %28 : vector<256xf32> to vector<1x256xf32>
    %30 = arith.subf %15, %23 : vector<1x256xf32>
    %31 = arith.mulf %29, %30 : vector<1x256xf32>
    %c0_i32_13 = arith.constant 0 : i32
    %32 = vector.broadcast %c0_i32_13 : i32 to vector<1x256xi32>
    %33 = arith.cmpi sge, %6, %32 : vector<1x256xi32>
    %cst_14 = arith.constant 0.000000e+00 : f32
    %34 = vector.broadcast %cst_14 : f32 to vector<1x256xf32>
    %35 = arith.select %33, %31, %34 : vector<1x256xi1>, vector<1x256xf32>
    %36 = arith.extui %33 : vector<1x256xi1> to vector<1x256xi32>
    %37 = arith.sitofp %36 : vector<1x256xi32> to vector<1x256xf32>
    %38 = tpu.iota {dimensions = array<i32: 0>} : vector<2x256xi32>
    %c0_15 = arith.constant 0 : index
    %c0_16 = arith.constant 0 : index
    %c0_17 = arith.constant 0 : index
    %39 = vector.load %arg5[%c0_15, %c0_16, %c0_17] : memref<1x2x256xf32, #tpu.memory_space<vmem>>, vector<1x2x256xf32>
    %40 = vector.shape_cast %39 : vector<1x2x256xf32> to vector<2x256xf32>
    %c0_i32_18 = arith.constant 0 : i32
    %41 = vector.broadcast %c0_i32_18 : i32 to vector<2x256xi32>
    %42 = arith.cmpi eq, %38, %41 : vector<2x256xi32>
    %43 = vector.shape_cast %35 : vector<1x256xf32> to vector<1x256xf32>
    %44 = vector.broadcast %43 : vector<1x256xf32> to vector<2x256xf32>
    %45 = vector.shape_cast %37 : vector<1x256xf32> to vector<1x256xf32>
    %46 = vector.broadcast %45 : vector<1x256xf32> to vector<2x256xf32>
    %47 = arith.select %42, %44, %46 : vector<2x256xi1>, vector<2x256xf32>
    %48 = arith.addf %40, %47 : vector<2x256xf32>
    %c0_19 = arith.constant 0 : index
    %c0_20 = arith.constant 0 : index
    %c0_21 = arith.constant 0 : index
    %49 = vector.load %arg5[%c0_19, %c0_20, %c0_21] : memref<1x2x256xf32, #tpu.memory_space<vmem>>, vector<1x2x256xf32>
    %50 = vector.shape_cast %49 : vector<1x2x256xf32> to vector<2x256xf32>
    %51 = vector.shape_cast %48 : vector<2x256xf32> to vector<1x2x256xf32>
    tpu.vector_store %arg5[%c0_19, %c0_20, %c0_21], %51 {strides = array<i32>} : memref<1x2x256xf32, #tpu.memory_space<vmem>>, vector<1x2x256xf32>,
    return
  }
  func.func @transform_0(%arg0: i32, %arg1: i32) -> (i32, i32, i32) {
    %c0_i32 = arith.constant 0 : i32
    %c0_i32_0 = arith.constant 0 : i32
    return %arg0, %c0_i32, %arg1 : i32, i32, i32
  }
  func.func @transform_1(%arg0: i32, %arg1: i32) -> (i32, i32, i32) {
    %c0_i32 = arith.constant 0 : i32
    %c0_i32_0 = arith.constant 0 : i32
    return %arg0, %c0_i32, %arg1 : i32, i32, i32
  }
  func.func @transform_2(%arg0: i32, %arg1: i32) -> (i32, i32) {
    %c0_i32 = arith.constant 0 : i32
    %c0_i32_0 = arith.constant 0 : i32
    %c0_i32_1 = arith.constant 0 : i32
    return %c0_i32, %c0_i32_0 : i32, i32
  }
  func.func @transform_3(%arg0: i32, %arg1: i32) -> (i32, i32, i32) {
    %c0_i32 = arith.constant 0 : i32
    %c0_i32_0 = arith.constant 0 : i32
    %c0_i32_1 = arith.constant 0 : i32
    return %arg0, %c0_i32, %c0_i32_0 : i32, i32, i32
  }
}

</mosaic_0001>

<bundles_post_ra>
// kernel: tpu_custom_call.1
= control target key start
LH: loop header
LB: loop body
LE: loop exit
PB: predicated region body
PF: predicated region fallthrough
CT: control target
= control target key end

     0   :  { %8 = vsyncpa [#allocation3], 0  ;;  %s989_s0 = inlined_call_operand.hbm [shape: f32[2,4,256], index: 0, kind: input, shape index: {}]   ;;  %s990_s1 = inlined_call_operand.vmem [shape: s32[2,1,256], index: 1, kind: input, shape index: {}]   ;;  %s991_s2 = inlined_call_operand.vmem [shape: f32[4,1], index: 2, kind: input, shape index: {}]   ;;  %s992_s3 = inlined_call_operand.hbm [shape: f32[2,2,256], index: 3, kind: output, shape index: {}]  }
   0x1   :  { %10 = vsyncpa [#allocation3 + $0x1], 0 }
   0x2   :  { %11 = vsyncpa [#allocation4], 0 }
   0x3   :  { %13 = vsyncpa [#allocation4 + $0x1], 0  ;;  %s752_s12 = smov 0   ;;  %s754_s13 = smov 0  }
   0x4   :  { %s756_s14 = smov 0   ;;  %s758_s15 = smov 0  }
   0x5   :  { %s760_s16 = smov 0   ;;  %s762_s17 = smov 0  }
   0x6 LB: > { %s519_s18 = sadd.s32 4294967295, %s724_s17   ;;  %s520_s19 = sadd.s32 4294967294, %s724_s17   ;;  %s724_s17 = sphi %s762_s17, %s19_s17   ;;  %s720_s16 = sphi %s760_s16, %s1012_s16   ;;  %s716_s15 = sphi %s758_s15, %s1011_s15   ;;  %s712_s14 = sphi %s756_s14, %s1010_s14   ;;  %s708_s13 = sphi %s754_s13, %s1009_s13   ;;  %s704_s12 = sphi %s752_s12, %s1008_s12  }
   0x7   : > { %s31_s20 = sadd.s32 1, %s720_s16  ;;  %s40_s21 = sadd.s32 1, %s712_s14 }
   0x8   : > { %p33_p0 = scmp.ge.s32.totalorder %s31_s20, 2  ;;  %p47_p1 = scmp.ne.s32.totalorder %s712_s14, %s708_s13 }
   0x9   : > { %p48_p2 = scmp.eq.s32.totalorder %s724_s17, 0  ;;  %p53_p3 = scmp.ne.s32.totalorder %s708_s13, %s704_s12 }
   0xa   : > { %s1014_s20 = smov (%p33_p0, %s31_s20), 0  ;;  %p54_p5 = scmp.eq.s32.totalorder %s519_s18, 0 }
   0xb   : > { %p793_p4 = por %p48_p2, %p47_p1  ;;  %s35_s23 = ssub.s32 %s720_s16, %s1014_s20 }
   0xc   : > { %p126_p6 = scmp.eq.s32.totalorder %s519_s18, 1  ;;  %p38_p7 = scmp.eq.s32.totalorder %s35_s23, 0 }
   0xd   : > { %p799_p8 = por %p54_p5, %p53_p3  ;;  %p132_p10 = scmp.eq.s32.totalorder %s520_s19, 1 }
   0xe   : > { %p803_p9 = por %p126_p6, %p47_p1  ;;  %p550_p13 = scmp.lt.s32.totalorder %s724_s17, 2 }
   0xf   : > { %s808_s26 = scalar_select %p38_p7, %s712_s14, %s40_s21  }
  0x10   : > { %s996_s25 = scalar_select %p803_p9, 1, 0 }
  0x11   : > { %p810_p11 = por %p132_p10, %p53_p3  ;;  %s155_s28 = sand.u32 1, %s712_s14  }
  0x12   : > { %s523_s29 = sshll.u32 %s155_s28, 3  ;;  %s536_s30 = sshll.u32 %s720_s16, 7 }
  0x13   : > { %s997_s27 = scalar_select %p810_p11, 1, 0 }
  0x14   : > { %s821_s6 = scalar_lea.hbm %s989_s0, %s536_s30  ;;  %s159_s7 = scalar_lea.vmem [#allocation2], %s523_s29 }
  0x15   : > { %s169_s8 = sshll.u32 %s159_s7, 4  ;;  %p827_p0 = pnand %p550_p13, %p793_p4  ;;  %s823_s8 = int_to_ptr.vmem [resolvable:$true] %s169_s8 }
  0x16   : > { %s156_s10 = scalar_lea.sflag [#allocation3], %s155_s28  ;;  %s612_s11 = scalar_lea.hbm %s821_s6, 128 }
  0x17   : > { %p613_p3 = scmp.ne.s32.totalorder %s821_s6, %s612_s11  ;;  %p614_p5 = pneg %p827_p0 }
  0x18   : > { %s617_s21 = scalar_lea.hbm %s989_s0, 256  ;;  %p618_p4 = scmp.lt.u32.totalorder %s821_s6, %s989_s0 }
  0x19   : > { %p615_p6 = pnand %p614_p5, %p613_p3  ;;  %p619_p10 = scmp.lt.u32.totalorder %s617_s21, %s612_s11 }
  0x1a   : > { %p621_p12 = scmp.lt.u32.totalorder %s612_s11, %s821_s6 }
  0x1b   : > { %p616_p7 = pneg %p615_p6  ;;  %p620_p13 = por %p619_p10, %p618_p4 }
  0x1d   : > { %p622_p1 = por %p621_p12, %p620_p13 }
  0x1f   : > { %p623_p2 = pnand %p622_p1, %p616_p7 }
  0x21   : > { %626 = shalt.err (!%p623_p2)
}
  0x22   : > { %s627_s28 = scalar_lea.vmem %s823_s8, 128  ;;  %s726_s29 = smov [#allocation2]  }
  0x23   : > { %p628_p3 = scmp.ne.s32.totalorder %s823_s8, %s627_s28  ;;  %s632_s30 = sshll.u32 %s726_s29, 4  ;;  %s633_s30 = int_to_ptr.vmem [resolvable:$false] %s632_s30 }
  0x24   : > { %s634_s4 = scalar_lea.vmem %s633_s30, 256  ;;  %p635_p9 = scmp.lt.s32.totalorder %s823_s8, %s633_s30 }
  0x25   : > { %p630_p6 = pnand %p628_p3, %p614_p5  ;;  %p636_p4 = scmp.lt.s32.totalorder %s634_s4, %s627_s28 }
  0x27   : > { %p631_p11 = pneg %p630_p6  ;;  %p637_p10 = por %p636_p4, %p635_p9 }
  0x29   : > { %p638_p12 = pnand %p637_p10, %p631_p11 }
  0x2b   : > { %641 = shalt.err (!%p638_p12)
}
  0x2c   : > { %545 = dma.hbm_to_vmem [thread:$0]  (!%p827_p0), %s821_s6, 128, %s823_s8, %s156_s10  }
  0x2d   : > { %p999_p1 = scmp.lt.s32.totalorder %s724_s17, 3  ;;  %p1000_p2 = scmp.ge.s32.totalorder %s724_s17, 1 }
  0x2f   : > { %p187_p5 = pnand %p1000_p2, %p999_p1 }
  0x30   : > { %s863_s5 = sand.u32 (!%p187_p5), 1, %s708_s13  }
  0x31   : > { %190 = sbr.rel (%p187_p5) target bundleno = 233 (0xe9), region = 32  ;;  %s527_s7 = sshll.u32 (!%p187_p5), %s863_s5, 3 }
  0x32   : > { %s193_s11 = scalar_lea.sflag (!%p187_p5), [#allocation3], %s863_s5  ;;  %s196_s18 = scalar_lea.vmem (!%p187_p5), [#allocation2], %s527_s7 }
  0x38   : > { %695 = dma.done.wait (%p799_p8), %s193_s11, 128  }
  0x39   : > { %697 = vsyncadd (%p799_p8), %s193_s11, 4294967168  ;;  %v727_v0 = vmov 0   ;;  %v244_v1 = vld [vmem:[%s991_s2] sm:$0xf]  ;;  %s528_s9 = sshll.u32 %s863_s5, 2  ;;  %v728_v2 = vmov 0.0   ;;  %v291_v23 = vlaneseq }
  0x3a   : > { %604 = vset.pattern.permute.xlu0 %v727_v0  ;;  %s875_s10 = scalar_lea.vmem [#allocation5], %s528_s9  ;;  %v242_v3 = vld [vmem:[%s196_s18] sm:$0xff]  ;;  %vm248_vm0 = vcmask 1043456   ;;  %p229_p8 = scmp.lt.s32.totalorder %s716_s15, 1 }
  0x3b   : > { %324 = vperm.xlu0 %604, %v244_v1   ;;  %241 = vst [vmem:[%s875_s10] sm:$0xf] %v728_v2  ;;  %v246_v4 = vcombine.high %v242_v3, %v242_v3  ;;  %v249_v5 = vsel %vm248_vm0, %v242_v3, -inf  ;;  %v883_v25 = vshrl.u32 %v291_v23, 7  ;;  %s537_s28 = sshll.u32 %s716_s15, 6  ;;  %s423_s29 = sshll.u32 %s875_s10, 4  ;;  %s941_s29 = int_to_ptr.vmem [resolvable:$true] %s423_s29 }
  0x3c   : > { %v250_v7 = vrot.slane %v249_v5, 4  ;;  %s230_s24 = scalar_select %p229_p8, %s716_s15, 1 }
  0x3d   : > { %v256_v6 = vsel %vm248_vm0, %v246_v4, -inf  ;;  %v891_v28 = vsub.s32 0, %v883_v25  ;;  %v894_v29 = vsub.s32 1, %v883_v25  ;;  %vm370_vm4 = vcmp.eq.s32.totalorder %v883_v25, 0  ;;  %s939_s7 = scalar_lea.hbm %s992_s3, %s537_s28  ;;  %s409_s11 = scalar_lea.sflag [#allocation4], %s863_s5 }
  0x3e   : > { %v257_v8 = vrot.slane %v256_v6, 4  ;;  %v251_v9 = vmax.f32 %v249_v5, %v250_v7  ;;  %s529_s19 = sshll.u32 %s230_s24, 1  ;;  %s642_s18 = scalar_lea.vmem %s941_s29, 64 }
  0x3f   : > { %s235_s23 = scalar_lea.vmem %s990_s1, %s529_s19  ;;  %p643_p9 = scmp.ne.s32.totalorder %s941_s29, %s642_s18 }
  0x40   : > { %v258_v10 = vmax.f32 %v256_v6, %v257_v8  ;;  %v252_v11 = vrot.slane %v251_v9, 2  ;;  %v896_v31 = vld [vmem:[%s235_s23] sm:$0x3]  ;;  %p1005_p11 = scmp.ne.s32.totalorder %s996_s25, 0  ;;  %s731_s15 = smov [#allocation5]  }
  0x41   : > { %v296_v34 = vrot.slane %v896_v31, %v891_v28  ;;  %v300_v35 = vrot.slane %v896_v31, %v894_v29  ;;  %vm347_vm3 = vcmp.ge.s32.totalorder %v896_v31, 0  ;;  %s646_s6 = sshll.u32 %s731_s15, 4  ;;  %s647_s6 = int_to_ptr.vmem [resolvable:$false] %s646_s6 }
  0x42   : > { %v259_v12 = vrot.slane %v258_v10, 2  ;;  %v253_v13 = vmax.f32 %v251_v9, %v252_v11  ;;  %p644_p0 = pnand %p643_p9, %p1005_p11  ;;  %s648_s8 = scalar_lea.vmem %s647_s6, 128 }
  0x43   : > { %vm903_vm1 = vcmp.eq.s32.totalorder %v883_v25, %v296_v34  ;;  %vm908_vm2 = vcmp.eq.s32.totalorder %v883_v25, %v300_v35  ;;  %v730_v35 = vmov 1983009808   ;;  %p649_p13 = scmp.lt.s32.totalorder %s941_s29, %s647_s6  ;;  %p650_p3 = scmp.lt.s32.totalorder %s648_s8, %s642_s18 }
  0x44   : > { %v260_v14 = vmax.f32 %v258_v10, %v259_v12  ;;  %v254_v15 = vrot.slane %v253_v13, 1  ;;  %v729_v10 = vmov 1966171168   ;;  %p645_p7 = pneg %p644_p0 }
  0x45   : > { %v352_v11 = vunpack.c.l.s4 %v729_v10  ;;  %p651_p6 = por %p650_p3, %p649_p13 }
  0x46   : > { %v261_v16 = vrot.slane %v260_v14, 1  ;;  %v255_v17 = vmax.f32 %v253_v13, %v254_v15 }
  0x47   : > { %p652_p4 = pnand %p651_p6, %p645_p7 }
  0x48   : > { %v262_v18 = vmax.f32 %v260_v14, %v261_v16 }
  0x4a   : > { %v265_v19 = vcombine.low %v255_v17, %v262_v18 }
  0x4c   : > { %v267_v20 = vsub.f32 %v242_v3, %v265_v19 }
  0x4e   : > { %v268_v21 = vmul.f32 1.442695, %v267_v20  ;;  %v304_v37 = vcombine.high %v267_v20, %v267_v20  ;;  %v306_v42 = vsel %vm903_vm1, %v267_v20, 0.0  ;;  %v353_v20 = vunpack.c.0.s8 %v352_v11 }
  0x4f   : > { %v308_v46 = vsel %vm248_vm0, %v306_v42, 0.0 }
  0x50   : > { %606 = vpow2.f32 %v268_v21  ;;  %v307_v43 = vsel %vm908_vm2, %v304_v37, 0.0  ;;  %v309_v50 = vrot.slane %v308_v46, 4 }
  0x51   : > { %v315_v47 = vsel %vm248_vm0, %v307_v43, 0.0 }
  0x52   : > { %v316_v51 = vrot.slane %v315_v47, 4  ;;  %v310_v54 = vadd.f32 %v309_v50, %v308_v46 }
  0x54   : > { %v317_v55 = vadd.f32 %v316_v51, %v315_v47  ;;  %v311_v56 = vrot.slane %v310_v54, 2 }
  0x56   : > { %v318_v57 = vrot.slane %v317_v55, 2  ;;  %v312_v58 = vadd.f32 %v311_v56, %v310_v54 }
  0x58   : > { %v319_v59 = vadd.f32 %v318_v57, %v317_v55  ;;  %v313_v63 = vrot.slane %v312_v58, 1 }
  0x5a   : > { %v607_v22 = vpop.eup %606  ;;  %v320_v0 = vrot.slane %v319_v59, 1  ;;  %v314_v12 = vadd.f32 %v313_v63, %v312_v58 }
  0x5b   : > { %v271_v24 = vcombine.high %v607_v22, %v607_v22  ;;  %v273_v26 = vsel %vm248_vm0, %v607_v22, 0.0 }
  0x5c   : > { %v274_v30 = vrot.slane %v273_v26, 4  ;;  %v321_v13 = vadd.f32 %v320_v0, %v319_v59 }
  0x5d   : > { %v280_v27 = vsel %vm248_vm0, %v271_v24, 0.0 }
  0x5e   : > { %v281_v32 = vrot.slane %v280_v27, 4  ;;  %v275_v33 = vadd.f32 %v274_v30, %v273_v26  ;;  %v356_v30 = vsub.s32 %v353_v20, %v883_v25 }
  0x60   : > { %v282_v36 = vadd.f32 %v281_v32, %v280_v27  ;;  %v276_v38 = vrot.slane %v275_v33, 2 }
  0x62   : > { %v283_v41 = vrot.slane %v282_v36, 2  ;;  %v277_v44 = vadd.f32 %v276_v38, %v275_v33  ;;  %v530_v38 = vsel %vm347_vm3, 1.0, %v728_v2 }
  0x63   : > { %v390_v42 = vrot.slane %v530_v38, %v894_v29 }
  0x64   : > { %v284_v45 = vadd.f32 %v283_v41, %v282_v36  ;;  %v278_v48 = vrot.slane %v277_v44, 1  ;;  %v399_v36 = vunpack.c.l.s4 %v730_v35  ;;  %v386_v41 = vrot.slane %v530_v38, %v891_v28 }
  0x66   : > { %v285_v49 = vrot.slane %v284_v45, 1  ;;  %v279_v52 = vadd.f32 %v278_v48, %v277_v44  ;;  %v400_v40 = vunpack.c.0.s8 %v399_v36  ;;  %v369_v48 = vld [vmem:[%s875_s10] sm:$0xf] }
  0x68   : > { %v286_v53 = vadd.f32 %v285_v49, %v284_v45  ;;  %608 = vlog2.f32 %v279_v52  ;;  %v403_v45 = vsub.s32 %v400_v40, %v883_v25 }
  0x6a   : > { %610 = vlog2.f32 %v286_v53 }
  0x72   : > { %v609_v4 = vpop.eup %608 }
  0x73   : > { %v288_v14 = vmul.f32 0.6931472, %v609_v4 }
  0x74   : > { %v611_v7 = vpop.eup %610 }
  0x75   : > { %v290_v15 = vmul.f32 0.6931472, %v611_v7  ;;  %v343_v23 = vsub.f32 %v288_v14, %v314_v12 }
  0x77   : > { %v344_v24 = vsub.f32 %v290_v15, %v321_v13 }
  0xba   : > { %v325_v60 = vpop.permute.xlu0 %324 }
  0xbb   : > { %v327_v61 = vsel %vm903_vm1, %v325_v60, 0.0  ;;  %v328_v62 = vsel %vm908_vm2, %v325_v60, 0.0 }
  0xbc   : > { %v329_v1 = vsel %vm248_vm0, %v327_v61, 0.0  ;;  %v336_v3 = vsel %vm248_vm0, %v328_v62, 0.0 }
  0xbd   : > { %v330_v5 = vrot.slane %v329_v1, 4  ;;  %v337_v6 = vrot.slane %v336_v3, 4 }
  0xbf   : > { %v331_v8 = vadd.f32 %v330_v5, %v329_v1  ;;  %v338_v9 = vadd.f32 %v337_v6, %v336_v3 }
  0xc1   : > { %v332_v16 = vrot.slane %v331_v8, 2  ;;  %v339_v17 = vrot.slane %v338_v9, 2 }
  0xc3   : > { %v333_v18 = vadd.f32 %v332_v16, %v331_v8  ;;  %v340_v19 = vadd.f32 %v339_v17, %v338_v9 }
  0xc5   : > { %v334_v21 = vrot.slane %v333_v18, 1  ;;  %v341_v22 = vrot.slane %v340_v19, 1 }
  0xc7   : > { %v335_v26 = vadd.f32 %v334_v21, %v333_v18  ;;  %v342_v27 = vadd.f32 %v341_v22, %v340_v19 }
  0xc9   : > { %v345_v32 = vmul.f32 %v343_v23, %v335_v26  ;;  %v346_v33 = vmul.f32 %v344_v24, %v342_v27 }
  0xcb   : > { %v350_v34 = vcombine.low %v345_v32, %v346_v33 }
  0xcd   : > { %v357_v37 = vrot.slane %v350_v34, %v356_v30 }
  0xcf   : > { %v364_v39 = vrot.slane %v357_v37, %v356_v30 }
  0xd1   : > { %v366_v31 = vsel %vm347_vm3, %v364_v39, 0.0 }
  0xd2   : > { %v375_v43 = vrot.slane %v366_v31, %v891_v28  ;;  %v379_v44 = vrot.slane %v366_v31, %v894_v29 }
  0xd4   : > { %v393_v46 = vsel %vm370_vm4, %v375_v43, %v386_v41  ;;  %v394_v2 = vsel %vm370_vm4, %v379_v44, %v390_v42 }
  0xd5   : > { %v397_v47 = vcombine.low %v393_v46, %v394_v2 }
  0xd7   : > { %v404_v49 = vrot.slane %v397_v47, %v403_v45 }
  0xd9   : > { %v406_v50 = vadd.f32 %v404_v49, %v369_v48 }
  0xdb   : > { %407 = vst [vmem:[%s875_s10] sm:$0xf] %v406_v50 }
  0xdc   : > { %655 = shalt.err (!%p652_p4)
}
  0xdd   : > { %s656_s5 = scalar_lea.hbm %s939_s7, 64  ;;  %s660_s24 = scalar_lea.hbm %s992_s3, 128 }
  0xde   : > { %p657_p10 = scmp.ne.s32.totalorder %s939_s7, %s656_s5  ;;  %p661_p2 = scmp.lt.u32.totalorder %s939_s7, %s992_s3 }
  0xdf   : > { %p662_p5 = scmp.lt.u32.totalorder %s660_s24, %s656_s5  ;;  %p664_p9 = scmp.lt.u32.totalorder %s656_s5, %s939_s7 }
  0xe0   : > { %p658_p12 = pnand %p657_p10, %p1005_p11 }
  0xe1   : > { %p663_p8 = por %p662_p5, %p661_p2 }
  0xe2   : > { %p659_p1 = pneg %p658_p12 }
  0xe3   : > { %p665_p0 = por %p664_p9, %p663_p8 }
  0xe5   : > { %p666_p7 = pnand %p665_p0, %p659_p1 }
  0xe7   : > { %669 = shalt.err (!%p666_p7)
}
  0xe8   : > { %540 = dma.vmem_to_hbm [thread:$0]  (%p1005_p11), %s941_s29, 64, %s939_s7, %s409_s11  }
  0xe9 PF: > { %s435_s22 = sand.u32 1, %s704_s12   ;;  %p1006_p13 = scmp.ne.s32.totalorder %s997_s27, 0 }
  0xea   : > { %p1007_p3 = scmp.ge.s32.totalorder %s724_s17, 2  ;;  %s436_s23 = scalar_lea.sflag [#allocation4], %s435_s22 }
  0xec   : > { %p547_p6 = pnand %p1007_p3, %p1006_p13 }
  0xee   : > { %699 = dma.done.wait (!%p547_p6), %s436_s23, 64  }
  0xef   : > { %701 = vsyncadd (!%p547_p6), %s436_s23, 4294967232  ;;  %s19_s17 = sadd.s32 1, %s724_s17   ;;  %s1008_s12 = smov %s708_s13 }
  0xf0   : > { %p16_p4 = scmp.ge.s32.totalorder %s19_s17, 4   ;;  %s1009_s13 = smov %s712_s14 }
  0xf1   : > { %s1010_s14 = smov %s808_s26  ;;  %s1011_s15 = smov %s720_s16 }
  0xf2   : > { %s1012_s16 = smov %s1014_s20  ;;  %18 = sbr.rel (!%p16_p4) target bundleno = 6 (0x6), region = 84 }
  0xf9   :  { %441 = vsyncpa [#allocation3], 1 }
  0xfa   :  { %443 = vsyncpa [#allocation3 + $0x1], 1 }
  0xfb   :  { %444 = vsyncpa [#allocation4], 1 }
  0xfc   :  { %446 = vsyncpa [#allocation4 + $0x1], 1 }

</bundles_post_ra>
